<compile_context>
chip_gen: v5e
topology: v5e:2x2
jax: 0.10.0
libtpu: 0.0.40
codegen_flags: <defaults>
</compile_context>

<pallas_src>
import functools

import jax
import jax.numpy as jnp
from jax.experimental import pallas as pl
from jax.experimental.pallas import tpu as pltpu


def _residual_attn_block_kernel(
    x_ref, mask_ref,
    ln1_w_ref, ln1_b_ref,
    w_in_ref, b_in_ref,
    w_out_ref, b_out_ref,
    ln2_w_ref, ln2_b_ref,
    w_fc_ref, b_fc_ref,
    w_proj_ref, b_proj_ref,
    o_ref,
    *, n_head, head_group, eps, mm_dtype, approx_recip,
):
    Bb, L, D = x_ref.shape
    hd = D // n_head
    G = head_group
    Kg = G * hd
    BbL = Bb * L

    # Flatten the batch block so every projection runs with M = Bb*L on the MXU.
    x = x_ref[...].astype(jnp.float32).reshape(BbL, D)

    def layernorm(v, w, b):
        mu = jnp.mean(v, axis=-1, keepdims=True)
        var = jnp.mean((v - mu) ** 2, axis=-1, keepdims=True)
        return (v - mu) * jax.lax.rsqrt(var + eps) * w + b

    # ---- LN1 + fused QKV projection (1/sqrt(hd) folded into Q weights) ----
    ln1 = layernorm(x, ln1_w_ref[...].astype(jnp.float32),
                    ln1_b_ref[...].astype(jnp.float32))
    qkv = jnp.dot(ln1.astype(mm_dtype), w_in_ref[...].astype(mm_dtype),
                  preferred_element_type=jnp.float32) + b_in_ref[...].astype(jnp.float32)
    q = qkv[:, :D]
    k = qkv[:, D:2 * D]
    v = qkv[:, 2 * D:]

    mask = mask_ref[...].astype(jnp.float32)      # (Bb,L,L) or (1,L,L) -> broadcasts
    w_out = w_out_ref[...].astype(mm_dtype)       # (D, D)

    # ---- attention: per-head score/PV einsums, group-of-G out-proj fold ----
    attn = None
    for g in range(n_head // G):
        head_outs = []
        for h in range(g * G, (g + 1) * G):
            sl = slice(h * hd, (h + 1) * hd)
            qh = q[:, sl].reshape(Bb, L, hd).astype(mm_dtype)
            kh = k[:, sl].reshape(Bb, L, hd).astype(mm_dtype)
            vh = v[:, sl].reshape(Bb, L, hd).astype(mm_dtype)

            s = jnp.einsum('bqd,bkd->bqk', qh, kh,
                           preferred_element_type=jnp.float32) + mask
            s = s - jnp.max(s, axis=-1, keepdims=True)
            p = jnp.exp(s)
            # Deferred softmax normalization on the small (Bb,L,hd) output; the
            # divide lands on the EUP slot via approximate reciprocal.
            inv_denom = pl.reciprocal(jnp.sum(p, axis=-1, keepdims=True),
                                      approx=approx_recip)
            oh = jnp.einsum('bqk,bkd->bqd', p.astype(mm_dtype), vh,
                            preferred_element_type=jnp.float32)
            head_outs.append((oh * inv_denom).reshape(BbL, hd))

        og = head_outs[0] if G == 1 else jnp.concatenate(head_outs, axis=-1)
        contrib = jnp.dot(og.astype(mm_dtype), w_out[g * Kg:(g + 1) * Kg, :],
                          preferred_element_type=jnp.float32)   # K = G*hd fold
        attn = contrib if attn is None else attn + contrib
    attn = attn + b_out_ref[...].astype(jnp.float32)

    x1 = x + attn

    # ---- LN2 + MLP (c_fc -> QuickGELU -> c_proj) ----
    ln2 = layernorm(x1, ln2_w_ref[...].astype(jnp.float32),
                    ln2_b_ref[...].astype(jnp.float32))
    h1 = jnp.dot(ln2.astype(mm_dtype), w_fc_ref[...].astype(mm_dtype),
                 preferred_element_type=jnp.float32) + b_fc_ref[...].astype(jnp.float32)
    gelu = h1 * jax.nn.sigmoid(1.702 * h1)        # QuickGELU in f32 (VPU/EUP)
    mlp = jnp.dot(gelu.astype(mm_dtype), w_proj_ref[...].astype(mm_dtype),
                  preferred_element_type=jnp.float32) + b_proj_ref[...].astype(jnp.float32)

    o_ref[...] = (x1 + mlp).reshape(Bb, L, D).astype(o_ref.dtype)


def _block_spec(shape, index_map, single_buffer=False):
    """BlockSpec helper; requests single buffering for resident (constant-index)
    blocks, falling back cleanly if pipeline_mode is unsupported."""
    if single_buffer and hasattr(pl, "Buffered"):
        try:
            return pl.BlockSpec(shape, index_map, pipeline_mode=pl.Buffered(1))
        except (TypeError, ValueError):
            pass
    return pl.BlockSpec(shape, index_map)


def residual_attention_block(x_lnd, attn_mask, params, n_head, eps=1e-5,
                             precise=False, block_batch=None, shared_mask=False):
    L, N, D = x_lnd.shape
    assert D % n_head == 0
    hd = D // n_head

    # Head-group size: largest divisor of n_head with G*hd <= 256 so the
    # out-projection fold uses (near-)full MXU contraction depth.
    head_group = 1
    for cand in range(1, n_head + 1):
        if n_head % cand == 0 and cand * hd <= 256:
            head_group = cand

    # Pad L to a sublane multiple; padded key columns are masked off.
    L_pad = max(8, ((L + 7) // 8) * 8)
    pad = L_pad - L

    x_nld = jnp.transpose(x_lnd, (1, 0, 2))                    # (N, L, D)
    mask = jnp.asarray(attn_mask, jnp.float32)                 # keep additive mask f32
    if pad:
        x_nld = jnp.pad(x_nld, ((0, 0), (0, pad), (0, 0)))
        mask = jnp.pad(mask, ((0, 0), (0, pad), (0, pad)), constant_values=-1e9)

    mm_dtype = jnp.float32 if precise else jnp.bfloat16

    # Fold the 1/sqrt(hd) query scale into the Q columns of w_in / b_in (host-side
    # one-time weight transform, not a runtime pre-scale).
    scale = 1.0 / (hd ** 0.5)
    prepared = dict(params)
    prepared["w_in"] = jnp.asarray(params["w_in"], jnp.float32).at[:, :D].multiply(scale)
    prepared["b_in"] = jnp.asarray(params["b_in"], jnp.float32).at[:, :D].multiply(scale)

    param_order = [
        "ln1_w", "ln1_b", "w_in", "b_in", "w_out", "b_out",
        "ln2_w", "ln2_b", "w_fc", "b_fc", "w_proj", "b_proj",
    ]
    weight_keys = {"w_in", "w_out", "w_fc", "w_proj"}
    param_list = []
    for name in param_order:
        p = jnp.asarray(prepared[name])
        if (name in weight_keys) and not precise:
            p = p.astype(jnp.bfloat16)          # halve resident weight VMEM
        param_list.append(p)

    # ---- chip-generation-aware VMEM budget & batch-block heuristic ----
    try:
        vmem_cap = int(pltpu.get_tpu_info().vmem_capacity_bytes)
    except Exception:
        vmem_cap = 64 * 1024 * 1024             # conservative (v7x-sized) fallback
    vmem_limit = max(32 * 1024 * 1024,
                     min(vmem_cap - 12 * 1024 * 1024, 100 * 1024 * 1024))
    row_cap = 1024 if vmem_cap >= 96 * 1024 * 1024 else 256

    if block_batch is None:
        def pick(min_steps):
            best = None
            for cand in range(1, N + 1):
                if N % cand == 0 and cand * L_pad <= row_cap and N // cand >= min_steps:
                    best = cand
            return best
        # Prefer >=2 grid steps so the "parallel" axis can feed both v7x TensorCores.
        block_batch = pick(2) or pick(1) or 1
    Bb = block_batch
    assert N % Bb == 0

    if shared_mask:
        mask_in = mask[:1]
        mask_spec = _block_spec((1, L_pad, L_pad), lambda b: (0, 0, 0),
                                single_buffer=True)
    else:
        mask_in = mask
        mask_spec = pl.BlockSpec((Bb, L_pad, L_pad), lambda b: (b, 0, 0))

    def resident_spec(p):
        zeros = (0,) * p.ndim
        return _block_spec(p.shape, lambda b, _z=zeros: _z, single_buffer=True)

    kernel = functools.partial(
        _residual_attn_block_kernel,
        n_head=n_head, head_group=head_group, eps=eps,
        mm_dtype=mm_dtype, approx_recip=not precise)

    out_nld = pl.pallas_call(
        kernel,
        out_shape=jax.ShapeDtypeStruct((N, L_pad, D), x_lnd.dtype),
        grid_spec=pltpu.PrefetchScalarGridSpec(
            num_scalar_prefetch=0,
            grid=(N // Bb,),
            in_specs=[
                pl.BlockSpec((Bb, L_pad, D), lambda b: (b, 0, 0)),   # x block
                mask_spec,                                           # mask block
            ] + [resident_spec(p) for p in param_list],              # resident weights
            out_specs=pl.BlockSpec((Bb, L_pad, D), lambda b: (b, 0, 0)),
        ),
        compiler_params=pltpu.CompilerParams(
            dimension_semantics=("parallel",),       # megacore over batch blocks
            vmem_limit_bytes=int(vmem_limit),
        ),
    )(x_nld, mask_in, *param_list)

    if pad:
        out_nld = out_nld[:, :L, :]
    return jnp.transpose(out_nld, (1, 0, 2))                        # back to (L, N, D)


def _reference(x_lnd, attn_mask, params, n_head, eps=1e-5):
    """Pure-JAX f32 reference matching PyTorch semantics, for verification."""
    L, N, D = x_lnd.shape
    hd = D // n_head

    def layernorm(v, w, b):
        mu = jnp.mean(v, axis=-1, keepdims=True)
        var = jnp.mean((v - mu) ** 2, axis=-1, keepdims=True)
        return (v - mu) / jnp.sqrt(var + eps) * w[0] + b[0]

    x = jnp.transpose(x_lnd, (1, 0, 2))                             # (N, L, D)
    ln1 = layernorm(x, params["ln1_w"], params["ln1_b"])
    qkv = ln1 @ params["w_in"] + params["b_in"][0]
    q, k, v = qkv[..., :D], qkv[..., D:2 * D], qkv[..., 2 * D:]
    q = q.reshape(N, L, n_head, hd).transpose(0, 2, 1, 3) / (hd ** 0.5)
    k = k.reshape(N, L, n_head, hd).transpose(0, 2, 1, 3)
    v = v.reshape(N, L, n_head, hd).transpose(0, 2, 1, 3)
    s = jnp.einsum("nhqd,nhkd->nhqk", q, k) + attn_mask[:, None, :, :]
    p = jax.nn.softmax(s, axis=-1)
    o = jnp.einsum("nhqk,nhkd->nhqd", p, v).transpose(0, 2, 1, 3).reshape(N, L, D)
    attn = o @ params["w_out"] + params["b_out"][0]
    x1 = x + attn
    ln2 = layernorm(x1, params["ln2_w"], params["ln2_b"])
    h1 = ln2 @ params["w_fc"] + params["b_fc"][0]
    g = h1 * jax.nn.sigmoid(1.702 * h1)
    y = x1 + (g @ params["w_proj"] + params["b_proj"][0])
    return jnp.transpose(y, (1, 0, 2))


if __name__ == "__main__":
    # Small shapes consistent with the module.
    L, N, D, H = 8, 2, 32, 4
    key = jax.random.PRNGKey(0)
    ks = jax.random.split(key, 16)

    # Parameters stored pre-transposed so the kernel does plain `act @ W`.
    params = {
        "ln1_w": (1.0 + 0.1 * jax.random.normal(ks[10], (1, D))).astype(jnp.float32),
        "ln1_b": (0.05 * jax.random.normal(ks[11], (1, D))).astype(jnp.float32),
        # in_proj_weight: (3D, D) -> pass (D, 3D)
        "w_in": (jax.random.normal(ks[0], (3 * D, D)) * 0.08).T.astype(jnp.float32),
        "b_in": (jax.random.normal(ks[1], (1, 3 * D)) * 0.02).astype(jnp.float32),
        # out_proj.weight: (D, D) -> pass transposed
        "w_out": (jax.random.normal(ks[2], (D, D)) * 0.08).T.astype(jnp.float32),
        "b_out": (jax.random.normal(ks[3], (1, D)) * 0.02).astype(jnp.float32),
        "ln2_w": (1.0 + 0.1 * jax.random.normal(ks[12], (1, D))).astype(jnp.float32),
        "ln2_b": (0.05 * jax.random.normal(ks[13], (1, D))).astype(jnp.float32),
        # c_fc.weight: (4D, D) -> pass (D, 4D)
        "w_fc": (jax.random.normal(ks[4], (4 * D, D)) * 0.08).T.astype(jnp.float32),
        "b_fc": (jax.random.normal(ks[5], (1, 4 * D)) * 0.02).astype(jnp.float32),
        # c_proj.weight: (D, 4D) -> pass (4D, D)
        "w_proj": (jax.random.normal(ks[6], (D, 4 * D)) * 0.08).T.astype(jnp.float32),
        "b_proj": (jax.random.normal(ks[7], (1, D)) * 0.02).astype(jnp.float32),
    }

    x = jax.random.normal(ks[8], (L, N, D), jnp.float32)
    # Additive float attention mask, shape (N, L, L) as in the module's forward.
    attn_mask = (jax.random.normal(ks[9], (N, L, L)) * 0.5).astype(jnp.float32)

    ref = _reference(x, attn_mask, params, n_head=H)

    # Fast path: bf16 MXU operands, f32 accumulation, approx reciprocal.
    out_fast = residual_attention_block(x, attn_mask, params, n_head=H)
    out_fast = jax.block_until_ready(out_fast)
    assert out_fast.shape == (L, N, D)
    assert jnp.allclose(out_fast, ref, rtol=5e-2, atol=5e-2), "bf16 path mismatch"

    # Precise path: all-f32, exact reciprocal — tight check against reference.
    out_precise = residual_attention_block(x, attn_mask, params, n_head=H, precise=True)
    out_precise = jax.block_until_ready(out_precise)
    assert jnp.allclose(out_precise, ref, rtol=1e-3, atol=1e-3), "f32 path mismatch"

    # Shared-mask path: batch-invariant mask kept resident, DMA'd once.
    shared = jnp.broadcast_to(attn_mask[:1], (N, L, L))
    ref_shared = _reference(x, shared, params, n_head=H)
    out_shared = residual_attention_block(x, shared, params, n_head=H,
                                          precise=True, shared_mask=True)
    out_shared = jax.block_until_ready(out_shared)
    assert jnp.allclose(out_shared, ref_shared, rtol=1e-3, atol=1e-3), "shared-mask mismatch"

    print("KERNEL_OK")
</pallas_src>

<mosaic_0001>
module attributes {stable_mosaic.version = 11 : i64} {
  func.func @_residual_attn_block_kernel(%arg0: i32, %arg1: memref<1x8x32xf32, #tpu.memory_space<vmem>>, %arg2: memref<1x8x8xf32, #tpu.memory_space<vmem>>, %arg3: memref<1x32xf32, #tpu.memory_space<vmem>>, %arg4: memref<1x32xf32, #tpu.memory_space<vmem>>, %arg5: memref<32x96xbf16, #tpu.memory_space<vmem>>, %arg6: memref<1x96xf32, #tpu.memory_space<vmem>>, %arg7: memref<32x32xbf16, #tpu.memory_space<vmem>>, %arg8: memref<1x32xf32, #tpu.memory_space<vmem>>, %arg9: memref<1x32xf32, #tpu.memory_space<vmem>>, %arg10: memref<1x32xf32, #tpu.memory_space<vmem>>, %arg11: memref<32x128xbf16, #tpu.memory_space<vmem>>, %arg12: memref<1x128xf32, #tpu.memory_space<vmem>>, %arg13: memref<128x32xbf16, #tpu.memory_space<vmem>>, %arg14: memref<1x32xf32, #tpu.memory_space<vmem>>, %arg15: memref<1x8x32xf32, #tpu.memory_space<vmem>>) attributes {dimension_semantics = [#tpu.dimension_semantics<parallel>], iteration_bounds = array<i64: 2>, scalar_prefetch = 0 : i64, scratch_operands = 0 : i64, tpu.core_type = #tpu.core_type<tc>, window_params = [{transform_indices = @transform_0, window_bounds = array<i64: 1, 8, 32>}, {transform_indices = @transform_1, window_bounds = array<i64: 1, 8, 8>}, {pipeline_mode = #tpu.pipeline_mode<synchronous>, transform_indices = @transform_2, window_bounds = array<i64: 1, 32>}, {pipeline_mode = #tpu.pipeline_mode<synchronous>, transform_indices = @transform_3, window_bounds = array<i64: 1, 32>}, {pipeline_mode = #tpu.pipeline_mode<synchronous>, transform_indices = @transform_4, window_bounds = array<i64: 32, 96>}, {pipeline_mode = #tpu.pipeline_mode<synchronous>, transform_indices = @transform_5, window_bounds = array<i64: 1, 96>}, {pipeline_mode = #tpu.pipeline_mode<synchronous>, transform_indices = @transform_6, window_bounds = array<i64: 32, 32>}, {pipeline_mode = #tpu.pipeline_mode<synchronous>, transform_indices = @transform_7, window_bounds = array<i64: 1, 32>}, {pipeline_mode = #tpu.pipeline_mode<synchronous>, transform_indices = @transform_8, window_bounds = array<i64: 1, 32>}, {pipeline_mode = #tpu.pipeline_mode<synchronous>, transform_indices = @transform_9, window_bounds = array<i64: 1, 32>}, {pipeline_mode = #tpu.pipeline_mode<synchronous>, transform_indices = @transform_10, window_bounds = array<i64: 32, 128>}, {pipeline_mode = #tpu.pipeline_mode<synchronous>, transform_indices = @transform_11, window_bounds = array<i64: 1, 128>}, {pipeline_mode = #tpu.pipeline_mode<synchronous>, transform_indices = @transform_12, window_bounds = array<i64: 128, 32>}, {pipeline_mode = #tpu.pipeline_mode<synchronous>, transform_indices = @transform_13, window_bounds = array<i64: 1, 32>}, {transform_indices = @transform_14, window_bounds = array<i64: 1, 8, 32>}]} {
    %c0 = arith.constant 0 : index
    %c0_0 = arith.constant 0 : index
    %c0_1 = arith.constant 0 : index
    %0 = vector.load %arg1[%c0, %c0_0, %c0_1] : memref<1x8x32xf32, #tpu.memory_space<vmem>>, vector<1x8x32xf32>
    %1 = vector.shape_cast %0 : vector<1x8x32xf32> to vector<8x32xf32>
    %c0_2 = arith.constant 0 : index
    %c0_3 = arith.constant 0 : index
    %2 = vector.load %arg3[%c0_2, %c0_3] : memref<1x32xf32, #tpu.memory_space<vmem>>, vector<1x32xf32>
    %c0_4 = arith.constant 0 : index
    %c0_5 = arith.constant 0 : index
    %3 = vector.load %arg4[%c0_4, %c0_5] : memref<1x32xf32, #tpu.memory_space<vmem>>, vector<1x32xf32>
    %cst = arith.constant dense<0.000000e+00> : vector<8xf32>
    %4 = vector.multi_reduction <add>, %1, %cst [1] : vector<8x32xf32> to vector<8xf32>
    %5 = vector.shape_cast %4 : vector<8xf32> to vector<8x1xf32>
    %cst_6 = arith.constant 3.200000e+01 : f32
    %6 = vector.broadcast %cst_6 : f32 to vector<8x1xf32>
    %7 = arith.divf %5, %6 : vector<8x1xf32>
    %8 = vector.broadcast %7 : vector<8x1xf32> to vector<8x32xf32>
    %9 = arith.subf %1, %8 : vector<8x32xf32>
    %10 = arith.mulf %9, %9 : vector<8x32xf32>
    %cst_7 = arith.constant dense<0.000000e+00> : vector<8xf32>
    %11 = vector.multi_reduction <add>, %10, %cst_7 [1] : vector<8x32xf32> to vector<8xf32>
    %12 = vector.shape_cast %11 : vector<8xf32> to vector<8x1xf32>
    %cst_8 = arith.constant 3.200000e+01 : f32
    %13 = vector.broadcast %cst_8 : f32 to vector<8x1xf32>
    %14 = arith.divf %12, %13 : vector<8x1xf32>
    %15 = vector.broadcast %7 : vector<8x1xf32> to vector<8x32xf32>
    %16 = arith.subf %1, %15 : vector<8x32xf32>
    %cst_9 = arith.constant 9.99999974E-6 : f32
    %17 = vector.broadcast %cst_9 : f32 to vector<8x1xf32>
    %18 = arith.addf %14, %17 : vector<8x1xf32>
    %19 = math.rsqrt %18 : vector<8x1xf32>
    %20 = vector.broadcast %19 : vector<8x1xf32> to vector<8x32xf32>
    %21 = arith.mulf %16, %20 : vector<8x32xf32>
    %22 = vector.broadcast %2 : vector<1x32xf32> to vector<8x32xf32>
    %23 = arith.mulf %21, %22 : vector<8x32xf32>
    %24 = vector.broadcast %3 : vector<1x32xf32> to vector<8x32xf32>
    %25 = arith.addf %23, %24 : vector<8x32xf32>
    %26 = arith.truncf %25 : vector<8x32xf32> to vector<8x32xbf16>
    %c0_10 = arith.constant 0 : index
    %c0_11 = arith.constant 0 : index
    %27 = vector.load %arg5[%c0_10, %c0_11] : memref<32x96xbf16, #tpu.memory_space<vmem>>, vector<32x96xbf16>
    %cst_12 = arith.constant dense<0.000000e+00> : vector<8x96xf32>
    %28 = tpu.matmul %26, %27, %cst_12 {dimension_numbers = #tpu.dot_dimension_numbers<[1], [0], [0], [1], [0, 0, 1, 1], [], []>} : vector<8x32xbf16>, vector<32x96xbf16>, vector<8x96xf32> -> vector<8x96xf32>
    %c0_13 = arith.constant 0 : index
    %c0_14 = arith.constant 0 : index
    %29 = vector.load %arg6[%c0_13, %c0_14] : memref<1x96xf32, #tpu.memory_space<vmem>>, vector<1x96xf32>
    %30 = vector.broadcast %29 : vector<1x96xf32> to vector<8x96xf32>
    %31 = arith.addf %28, %30 : vector<8x96xf32>
    %32 = vector.extract_strided_slice %31 {offsets = [0, 0], sizes = [8, 32], strides = [1, 1]} : vector<8x96xf32> to vector<8x32xf32>
    %33 = vector.extract_strided_slice %31 {offsets = [0, 32], sizes = [8, 32], strides = [1, 1]} : vector<8x96xf32> to vector<8x32xf32>
    %34 = vector.extract_strided_slice %31 {offsets = [0, 64], sizes = [8, 32], strides = [1, 1]} : vector<8x96xf32> to vector<8x32xf32>
    %c0_15 = arith.constant 0 : index
    %c0_16 = arith.constant 0 : index
    %c0_17 = arith.constant 0 : index
    %35 = vector.load %arg2[%c0_15, %c0_16, %c0_17] : memref<1x8x8xf32, #tpu.memory_space<vmem>>, vector<1x8x8xf32>
    %c0_18 = arith.constant 0 : index
    %c0_19 = arith.constant 0 : index
    %36 = vector.load %arg7[%c0_18, %c0_19] : memref<32x32xbf16, #tpu.memory_space<vmem>>, vector<32x32xbf16>
    %37 = vector.extract_strided_slice %32 {offsets = [0, 0], sizes = [8, 8], strides = [1, 1]} : vector<8x32xf32> to vector<8x8xf32>
    %38 = vector.shape_cast %37 : vector<8x8xf32> to vector<1x8x8xf32>
    %39 = arith.truncf %38 : vector<1x8x8xf32> to vector<1x8x8xbf16>
    %40 = vector.extract_strided_slice %33 {offsets = [0, 0], sizes = [8, 8], strides = [1, 1]} : vector<8x32xf32> to vector<8x8xf32>
    %41 = vector.shape_cast %40 : vector<8x8xf32> to vector<1x8x8xf32>
    %42 = arith.truncf %41 : vector<1x8x8xf32> to vector<1x8x8xbf16>
    %43 = vector.extract_strided_slice %34 {offsets = [0, 0], sizes = [8, 8], strides = [1, 1]} : vector<8x32xf32> to vector<8x8xf32>
    %44 = vector.shape_cast %43 : vector<8x8xf32> to vector<1x8x8xf32>
    %45 = arith.truncf %44 : vector<1x8x8xf32> to vector<1x8x8xbf16>
    "tpu.trace_start"() <{level = 10 : i32, message = "bqd,bkd->bqk"}> : () -> ()
    %cst_20 = arith.constant dense<0.000000e+00> : vector<1x8x8xf32>
    %46 = tpu.matmul %39, %42, %cst_20 {dimension_numbers = #tpu.dot_dimension_numbers<[2], [2], [1], [1], [0, 0, 0, 1, 1, 1], [0], [0]>} : vector<1x8x8xbf16>, vector<1x8x8xbf16>, vector<1x8x8xf32> -> vector<1x8x8xf32>
    "tpu.trace_stop"() : () -> ()
    %47 = arith.addf %46, %35 : vector<1x8x8xf32>
    %cst_21 = arith.constant dense<0xFF800000> : vector<1x8xf32>
    %48 = vector.multi_reduction <maximumf>, %47, %cst_21 [2] : vector<1x8x8xf32> to vector<1x8xf32>
    %49 = vector.shape_cast %48 : vector<1x8xf32> to vector<1x8x1xf32>
    %50 = vector.broadcast %49 : vector<1x8x1xf32> to vector<1x8x8xf32>
    %51 = arith.subf %47, %50 : vector<1x8x8xf32>
    %52 = math.exp %51 : vector<1x8x8xf32>
    %cst_22 = arith.constant dense<0.000000e+00> : vector<1x8xf32>
    %53 = vector.multi_reduction <add>, %52, %cst_22 [2] : vector<1x8x8xf32> to vector<1x8xf32>
    %54 = vector.shape_cast %53 : vector<1x8xf32> to vector<1x8x1xf32>
    %55 = tpu.reciprocal %54 {approx = true} : vector<1x8x1xf32> -> vector<1x8x1xf32>
    %56 = arith.truncf %52 : vector<1x8x8xf32> to vector<1x8x8xbf16>
    "tpu.trace_start"() <{level = 10 : i32, message = "bqk,bkd->bqd"}> : () -> ()
    %cst_23 = arith.constant dense<0.000000e+00> : vector<1x8x8xf32>
    %57 = tpu.matmul %56, %45, %cst_23 {dimension_numbers = #tpu.dot_dimension_numbers<[2], [1], [1], [2], [0, 0, 0, 1, 1, 2], [0], [0]>} : vector<1x8x8xbf16>, vector<1x8x8xbf16>, vector<1x8x8xf32> -> vector<1x8x8xf32>
    "tpu.trace_stop"() : () -> ()
    %58 = vector.broadcast %55 : vector<1x8x1xf32> to vector<1x8x8xf32>
    %59 = arith.mulf %57, %58 : vector<1x8x8xf32>
    %60 = vector.shape_cast %59 : vector<1x8x8xf32> to vector<8x8xf32>
    %61 = vector.extract_strided_slice %32 {offsets = [0, 8], sizes = [8, 8], strides = [1, 1]} : vector<8x32xf32> to vector<8x8xf32>
    %62 = vector.shape_cast %61 : vector<8x8xf32> to vector<1x8x8xf32>
    %63 = arith.truncf %62 : vector<1x8x8xf32> to vector<1x8x8xbf16>
    %64 = vector.extract_strided_slice %33 {offsets = [0, 8], sizes = [8, 8], strides = [1, 1]} : vector<8x32xf32> to vector<8x8xf32>
    %65 = vector.shape_cast %64 : vector<8x8xf32> to vector<1x8x8xf32>
    %66 = arith.truncf %65 : vector<1x8x8xf32> to vector<1x8x8xbf16>
    %67 = vector.extract_strided_slice %34 {offsets = [0, 8], sizes = [8, 8], strides = [1, 1]} : vector<8x32xf32> to vector<8x8xf32>
    %68 = vector.shape_cast %67 : vector<8x8xf32> to vector<1x8x8xf32>
    %69 = arith.truncf %68 : vector<1x8x8xf32> to vector<1x8x8xbf16>
    "tpu.trace_start"() <{level = 10 : i32, message = "bqd,bkd->bqk"}> : () -> ()
    %cst_24 = arith.constant dense<0.000000e+00> : vector<1x8x8xf32>
    %70 = tpu.matmul %63, %66, %cst_24 {dimension_numbers = #tpu.dot_dimension_numbers<[2], [2], [1], [1], [0, 0, 0, 1, 1, 1], [0], [0]>} : vector<1x8x8xbf16>, vector<1x8x8xbf16>, vector<1x8x8xf32> -> vector<1x8x8xf32>
    "tpu.trace_stop"() : () -> ()
    %71 = arith.addf %70, %35 : vector<1x8x8xf32>
    %cst_25 = arith.constant dense<0xFF800000> : vector<1x8xf32>
    %72 = vector.multi_reduction <maximumf>, %71, %cst_25 [2] : vector<1x8x8xf32> to vector<1x8xf32>
    %73 = vector.shape_cast %72 : vector<1x8xf32> to vector<1x8x1xf32>
    %74 = vector.broadcast %73 : vector<1x8x1xf32> to vector<1x8x8xf32>
    %75 = arith.subf %71, %74 : vector<1x8x8xf32>
    %76 = math.exp %75 : vector<1x8x8xf32>
    %cst_26 = arith.constant dense<0.000000e+00> : vector<1x8xf32>
    %77 = vector.multi_reduction <add>, %76, %cst_26 [2] : vector<1x8x8xf32> to vector<1x8xf32>
    %78 = vector.shape_cast %77 : vector<1x8xf32> to vector<1x8x1xf32>
    %79 = tpu.reciprocal %78 {approx = true} : vector<1x8x1xf32> -> vector<1x8x1xf32>
    %80 = arith.truncf %76 : vector<1x8x8xf32> to vector<1x8x8xbf16>
    "tpu.trace_start"() <{level = 10 : i32, message = "bqk,bkd->bqd"}> : () -> ()
    %cst_27 = arith.constant dense<0.000000e+00> : vector<1x8x8xf32>
    %81 = tpu.matmul %80, %69, %cst_27 {dimension_numbers = #tpu.dot_dimension_numbers<[2], [1], [1], [2], [0, 0, 0, 1, 1, 2], [0], [0]>} : vector<1x8x8xbf16>, vector<1x8x8xbf16>, vector<1x8x8xf32> -> vector<1x8x8xf32>
    "tpu.trace_stop"() : () -> ()
    %82 = vector.broadcast %79 : vector<1x8x1xf32> to vector<1x8x8xf32>
    %83 = arith.mulf %81, %82 : vector<1x8x8xf32>
    %84 = vector.shape_cast %83 : vector<1x8x8xf32> to vector<8x8xf32>
    %85 = vector.extract_strided_slice %32 {offsets = [0, 16], sizes = [8, 8], strides = [1, 1]} : vector<8x32xf32> to vector<8x8xf32>
    %86 = vector.shape_cast %85 : vector<8x8xf32> to vector<1x8x8xf32>
    %87 = arith.truncf %86 : vector<1x8x8xf32> to vector<1x8x8xbf16>
    %88 = vector.extract_strided_slice %33 {offsets = [0, 16], sizes = [8, 8], strides = [1, 1]} : vector<8x32xf32> to vector<8x8xf32>
    %89 = vector.shape_cast %88 : vector<8x8xf32> to vector<1x8x8xf32>
    %90 = arith.truncf %89 : vector<1x8x8xf32> to vector<1x8x8xbf16>
    %91 = vector.extract_strided_slice %34 {offsets = [0, 16], sizes = [8, 8], strides = [1, 1]} : vector<8x32xf32> to vector<8x8xf32>
    %92 = vector.shape_cast %91 : vector<8x8xf32> to vector<1x8x8xf32>
    %93 = arith.truncf %92 : vector<1x8x8xf32> to vector<1x8x8xbf16>
    "tpu.trace_start"() <{level = 10 : i32, message = "bqd,bkd->bqk"}> : () -> ()
    %cst_28 = arith.constant dense<0.000000e+00> : vector<1x8x8xf32>
    %94 = tpu.matmul %87, %90, %cst_28 {dimension_numbers = #tpu.dot_dimension_numbers<[2], [2], [1], [1], [0, 0, 0, 1, 1, 1], [0], [0]>} : vector<1x8x8xbf16>, vector<1x8x8xbf16>, vector<1x8x8xf32> -> vector<1x8x8xf32>
    "tpu.trace_stop"() : () -> ()
    %95 = arith.addf %94, %35 : vector<1x8x8xf32>
    %cst_29 = arith.constant dense<0xFF800000> : vector<1x8xf32>
    %96 = vector.multi_reduction <maximumf>, %95, %cst_29 [2] : vector<1x8x8xf32> to vector<1x8xf32>
    %97 = vector.shape_cast %96 : vector<1x8xf32> to vector<1x8x1xf32>
    %98 = vector.broadcast %97 : vector<1x8x1xf32> to vector<1x8x8xf32>
    %99 = arith.subf %95, %98 : vector<1x8x8xf32>
    %100 = math.exp %99 : vector<1x8x8xf32>
    %cst_30 = arith.constant dense<0.000000e+00> : vector<1x8xf32>
    %101 = vector.multi_reduction <add>, %100, %cst_30 [2] : vector<1x8x8xf32> to vector<1x8xf32>
    %102 = vector.shape_cast %101 : vector<1x8xf32> to vector<1x8x1xf32>
    %103 = tpu.reciprocal %102 {approx = true} : vector<1x8x1xf32> -> vector<1x8x1xf32>
    %104 = arith.truncf %100 : vector<1x8x8xf32> to vector<1x8x8xbf16>
    "tpu.trace_start"() <{level = 10 : i32, message = "bqk,bkd->bqd"}> : () -> ()
    %cst_31 = arith.constant dense<0.000000e+00> : vector<1x8x8xf32>
    %105 = tpu.matmul %104, %93, %cst_31 {dimension_numbers = #tpu.dot_dimension_numbers<[2], [1], [1], [2], [0, 0, 0, 1, 1, 2], [0], [0]>} : vector<1x8x8xbf16>, vector<1x8x8xbf16>, vector<1x8x8xf32> -> vector<1x8x8xf32>
    "tpu.trace_stop"() : () -> ()
    %106 = vector.broadcast %103 : vector<1x8x1xf32> to vector<1x8x8xf32>
    %107 = arith.mulf %105, %106 : vector<1x8x8xf32>
    %108 = vector.shape_cast %107 : vector<1x8x8xf32> to vector<8x8xf32>
    %109 = vector.extract_strided_slice %32 {offsets = [0, 24], sizes = [8, 8], strides = [1, 1]} : vector<8x32xf32> to vector<8x8xf32>
    %110 = vector.shape_cast %109 : vector<8x8xf32> to vector<1x8x8xf32>
    %111 = arith.truncf %110 : vector<1x8x8xf32> to vector<1x8x8xbf16>
    %112 = vector.extract_strided_slice %33 {offsets = [0, 24], sizes = [8, 8], strides = [1, 1]} : vector<8x32xf32> to vector<8x8xf32>
    %113 = vector.shape_cast %112 : vector<8x8xf32> to vector<1x8x8xf32>
    %114 = arith.truncf %113 : vector<1x8x8xf32> to vector<1x8x8xbf16>
    %115 = vector.extract_strided_slice %34 {offsets = [0, 24], sizes = [8, 8], strides = [1, 1]} : vector<8x32xf32> to vector<8x8xf32>
    %116 = vector.shape_cast %115 : vector<8x8xf32> to vector<1x8x8xf32>
    %117 = arith.truncf %116 : vector<1x8x8xf32> to vector<1x8x8xbf16>
    "tpu.trace_start"() <{level = 10 : i32, message = "bqd,bkd->bqk"}> : () -> ()
    %cst_32 = arith.constant dense<0.000000e+00> : vector<1x8x8xf32>
    %118 = tpu.matmul %111, %114, %cst_32 {dimension_numbers = #tpu.dot_dimension_numbers<[2], [2], [1], [1], [0, 0, 0, 1, 1, 1], [0], [0]>} : vector<1x8x8xbf16>, vector<1x8x8xbf16>, vector<1x8x8xf32> -> vector<1x8x8xf32>
    "tpu.trace_stop"() : () -> ()
    %119 = arith.addf %118, %35 : vector<1x8x8xf32>
    %cst_33 = arith.constant dense<0xFF800000> : vector<1x8xf32>
    %120 = vector.multi_reduction <maximumf>, %119, %cst_33 [2] : vector<1x8x8xf32> to vector<1x8xf32>
    %121 = vector.shape_cast %120 : vector<1x8xf32> to vector<1x8x1xf32>
    %122 = vector.broadcast %121 : vector<1x8x1xf32> to vector<1x8x8xf32>
    %123 = arith.subf %119, %122 : vector<1x8x8xf32>
    %124 = math.exp %123 : vector<1x8x8xf32>
    %cst_34 = arith.constant dense<0.000000e+00> : vector<1x8xf32>
    %125 = vector.multi_reduction <add>, %124, %cst_34 [2] : vector<1x8x8xf32> to vector<1x8xf32>
    %126 = vector.shape_cast %125 : vector<1x8xf32> to vector<1x8x1xf32>
    %127 = tpu.reciprocal %126 {approx = true} : vector<1x8x1xf32> -> vector<1x8x1xf32>
    %128 = arith.truncf %124 : vector<1x8x8xf32> to vector<1x8x8xbf16>
    "tpu.trace_start"() <{level = 10 : i32, message = "bqk,bkd->bqd"}> : () -> ()
    %cst_35 = arith.constant dense<0.000000e+00> : vector<1x8x8xf32>
    %129 = tpu.matmul %128, %117, %cst_35 {dimension_numbers = #tpu.dot_dimension_numbers<[2], [1], [1], [2], [0, 0, 0, 1, 1, 2], [0], [0]>} : vector<1x8x8xbf16>, vector<1x8x8xbf16>, vector<1x8x8xf32> -> vector<1x8x8xf32>
    "tpu.trace_stop"() : () -> ()
    %130 = vector.broadcast %127 : vector<1x8x1xf32> to vector<1x8x8xf32>
    %131 = arith.mulf %129, %130 : vector<1x8x8xf32>
    %132 = vector.shape_cast %131 : vector<1x8x8xf32> to vector<8x8xf32>
    %133 = tpu.concatenate %60, %84, %108, %132 in 1 : vector<8x8xf32>, vector<8x8xf32>, vector<8x8xf32>, vector<8x8xf32> -> vector<8x32xf32>
    %134 = arith.truncf %133 : vector<8x32xf32> to vector<8x32xbf16>
    %cst_36 = arith.constant dense<0.000000e+00> : vector<8x32xf32>
    %135 = tpu.matmul %134, %36, %cst_36 {dimension_numbers = #tpu.dot_dimension_numbers<[1], [0], [0], [1], [0, 0, 1, 1], [], []>} : vector<8x32xbf16>, vector<32x32xbf16>, vector<8x32xf32> -> vector<8x32xf32>
    %c0_37 = arith.constant 0 : index
    %c0_38 = arith.constant 0 : index
    %136 = vector.load %arg8[%c0_37, %c0_38] : memref<1x32xf32, #tpu.memory_space<vmem>>, vector<1x32xf32>
    %137 = vector.broadcast %136 : vector<1x32xf32> to vector<8x32xf32>
    %138 = arith.addf %135, %137 : vector<8x32xf32>
    %139 = arith.addf %1, %138 : vector<8x32xf32>
    %c0_39 = arith.constant 0 : index
    %c0_40 = arith.constant 0 : index
    %140 = vector.load %arg9[%c0_39, %c0_40] : memref<1x32xf32, #tpu.memory_space<vmem>>, vector<1x32xf32>
    %c0_41 = arith.constant 0 : index
    %c0_42 = arith.constant 0 : index
    %141 = vector.load %arg10[%c0_41, %c0_42] : memref<1x32xf32, #tpu.memory_space<vmem>>, vector<1x32xf32>
    %cst_43 = arith.constant dense<0.000000e+00> : vector<8xf32>
    %142 = vector.multi_reduction <add>, %139, %cst_43 [1] : vector<8x32xf32> to vector<8xf32>
    %143 = vector.shape_cast %142 : vector<8xf32> to vector<8x1xf32>
    %cst_44 = arith.constant 3.200000e+01 : f32
    %144 = vector.broadcast %cst_44 : f32 to vector<8x1xf32>
    %145 = arith.divf %143, %144 : vector<8x1xf32>
    %146 = vector.broadcast %145 : vector<8x1xf32> to vector<8x32xf32>
    %147 = arith.subf %139, %146 : vector<8x32xf32>
    %148 = arith.mulf %147, %147 : vector<8x32xf32>
    %cst_45 = arith.constant dense<0.000000e+00> : vector<8xf32>
    %149 = vector.multi_reduction <add>, %148, %cst_45 [1] : vector<8x32xf32> to vector<8xf32>
    %150 = vector.shape_cast %149 : vector<8xf32> to vector<8x1xf32>
    %cst_46 = arith.constant 3.200000e+01 : f32
    %151 = vector.broadcast %cst_46 : f32 to vector<8x1xf32>
    %152 = arith.divf %150, %151 : vector<8x1xf32>
    %153 = vector.broadcast %145 : vector<8x1xf32> to vector<8x32xf32>
    %154 = arith.subf %139, %153 : vector<8x32xf32>
    %cst_47 = arith.constant 9.99999974E-6 : f32
    %155 = vector.broadcast %cst_47 : f32 to vector<8x1xf32>
    %156 = arith.addf %152, %155 : vector<8x1xf32>
    %157 = math.rsqrt %156 : vector<8x1xf32>
    %158 = vector.broadcast %157 : vector<8x1xf32> to vector<8x32xf32>
    %159 = arith.mulf %154, %158 : vector<8x32xf32>
    %160 = vector.broadcast %140 : vector<1x32xf32> to vector<8x32xf32>
    %161 = arith.mulf %159, %160 : vector<8x32xf32>
    %162 = vector.broadcast %141 : vector<1x32xf32> to vector<8x32xf32>
    %163 = arith.addf %161, %162 : vector<8x32xf32>
    %164 = arith.truncf %163 : vector<8x32xf32> to vector<8x32xbf16>
    %c0_48 = arith.constant 0 : index
    %c0_49 = arith.constant 0 : index
    %165 = vector.load %arg11[%c0_48, %c0_49] : memref<32x128xbf16, #tpu.memory_space<vmem>>, vector<32x128xbf16>
    %cst_50 = arith.constant dense<0.000000e+00> : vector<8x128xf32>
    %166 = tpu.matmul %164, %165, %cst_50 {dimension_numbers = #tpu.dot_dimension_numbers<[1], [0], [0], [1], [0, 0, 1, 1], [], []>} : vector<8x32xbf16>, vector<32x128xbf16>, vector<8x128xf32> -> vector<8x128xf32>
    %c0_51 = arith.constant 0 : index
    %c0_52 = arith.constant 0 : index
    %167 = vector.load %arg12[%c0_51, %c0_52] : memref<1x128xf32, #tpu.memory_space<vmem>>, vector<1x128xf32>
    %168 = vector.broadcast %167 : vector<1x128xf32> to vector<8x128xf32>
    %169 = arith.addf %166, %168 : vector<8x128xf32>
    %cst_53 = arith.constant 1.702000e+00 : f32
    %170 = vector.broadcast %cst_53 : f32 to vector<8x128xf32>
    %171 = arith.mulf %170, %169 : vector<8x128xf32>
    %172 = arith.negf %171 : vector<8x128xf32>
    %173 = math.exp %172 : vector<8x128xf32>
    %cst_54 = arith.constant 1.000000e+00 : f32
    %174 = vector.broadcast %cst_54 : f32 to vector<8x128xf32>
    %175 = arith.addf %174, %173 : vector<8x128xf32>
    %176 = arith.divf %174, %175 : vector<8x128xf32>
    %177 = arith.mulf %169, %176 : vector<8x128xf32>
    %178 = arith.truncf %177 : vector<8x128xf32> to vector<8x128xbf16>
    %c0_55 = arith.constant 0 : index
    %c0_56 = arith.constant 0 : index
    %179 = vector.load %arg13[%c0_55, %c0_56] : memref<128x32xbf16, #tpu.memory_space<vmem>>, vector<128x32xbf16>
    %cst_57 = arith.constant dense<0.000000e+00> : vector<8x32xf32>
    %180 = tpu.matmul %178, %179, %cst_57 {dimension_numbers = #tpu.dot_dimension_numbers<[1], [0], [0], [1], [0, 0, 1, 1], [], []>} : vector<8x128xbf16>, vector<128x32xbf16>, vector<8x32xf32> -> vector<8x32xf32>
    %c0_58 = arith.constant 0 : index
    %c0_59 = arith.constant 0 : index
    %181 = vector.load %arg14[%c0_58, %c0_59] : memref<1x32xf32, #tpu.memory_space<vmem>>, vector<1x32xf32>
    %182 = vector.broadcast %181 : vector<1x32xf32> to vector<8x32xf32>
    %183 = arith.addf %180, %182 : vector<8x32xf32>
    %184 = arith.addf %139, %183 : vector<8x32xf32>
    %185 = vector.shape_cast %184 : vector<8x32xf32> to vector<1x8x32xf32>
    %c0_60 = arith.constant 0 : index
    %c0_61 = arith.constant 0 : index
    %c0_62 = arith.constant 0 : index
    %186 = vector.load %arg15[%c0_60, %c0_61, %c0_62] : memref<1x8x32xf32, #tpu.memory_space<vmem>>, vector<1x8x32xf32>
    tpu.vector_store %arg15[%c0_60, %c0_61, %c0_62], %185 {strides = array<i32>} : memref<1x8x32xf32, #tpu.memory_space<vmem>>, vector<1x8x32xf32>,
    return
  }
  func.func @transform_0(%arg0: i32) -> (i32, i32, i32) {
    %c0_i32 = arith.constant 0 : i32
    %c0_i32_0 = arith.constant 0 : i32
    %c0_i32_1 = arith.constant 0 : i32
    return %arg0, %c0_i32, %c0_i32_0 : i32, i32, i32
  }
  func.func @transform_1(%arg0: i32) -> (i32, i32, i32) {
    %c0_i32 = arith.constant 0 : i32
    %c0_i32_0 = arith.constant 0 : i32
    %c0_i32_1 = arith.constant 0 : i32
    return %arg0, %c0_i32, %c0_i32_0 : i32, i32, i32
  }
  func.func @transform_2(%arg0: i32) -> (i32, i32) {
    %c0_i32 = arith.constant 0 : i32
    %c0_i32_0 = arith.constant 0 : i32
    %c0_i32_1 = arith.constant 0 : i32
    return %c0_i32, %c0_i32_0 : i32, i32
  }
  func.func @transform_3(%arg0: i32) -> (i32, i32) {
    %c0_i32 = arith.constant 0 : i32
    %c0_i32_0 = arith.constant 0 : i32
    %c0_i32_1 = arith.constant 0 : i32
    return %c0_i32, %c0_i32_0 : i32, i32
  }
  func.func @transform_4(%arg0: i32) -> (i32, i32) {
    %c0_i32 = arith.constant 0 : i32
    %c0_i32_0 = arith.constant 0 : i32
    %c0_i32_1 = arith.constant 0 : i32
    return %c0_i32, %c0_i32_0 : i32, i32
  }
  func.func @transform_5(%arg0: i32) -> (i32, i32) {
    %c0_i32 = arith.constant 0 : i32
    %c0_i32_0 = arith.constant 0 : i32
    %c0_i32_1 = arith.constant 0 : i32
    return %c0_i32, %c0_i32_0 : i32, i32
  }
  func.func @transform_6(%arg0: i32) -> (i32, i32) {
    %c0_i32 = arith.constant 0 : i32
    %c0_i32_0 = arith.constant 0 : i32
    %c0_i32_1 = arith.constant 0 : i32
    return %c0_i32, %c0_i32_0 : i32, i32
  }
  func.func @transform_7(%arg0: i32) -> (i32, i32) {
    %c0_i32 = arith.constant 0 : i32
    %c0_i32_0 = arith.constant 0 : i32
    %c0_i32_1 = arith.constant 0 : i32
    return %c0_i32, %c0_i32_0 : i32, i32
  }
  func.func @transform_8(%arg0: i32) -> (i32, i32) {
    %c0_i32 = arith.constant 0 : i32
    %c0_i32_0 = arith.constant 0 : i32
    %c0_i32_1 = arith.constant 0 : i32
    return %c0_i32, %c0_i32_0 : i32, i32
  }
  func.func @transform_9(%arg0: i32) -> (i32, i32) {
    %c0_i32 = arith.constant 0 : i32
    %c0_i32_0 = arith.constant 0 : i32
    %c0_i32_1 = arith.constant 0 : i32
    return %c0_i32, %c0_i32_0 : i32, i32
  }
  func.func @transform_10(%arg0: i32) -> (i32, i32) {
    %c0_i32 = arith.constant 0 : i32
    %c0_i32_0 = arith.constant 0 : i32
    %c0_i32_1 = arith.constant 0 : i32
    return %c0_i32, %c0_i32_0 : i32, i32
  }
  func.func @transform_11(%arg0: i32) -> (i32, i32) {
    %c0_i32 = arith.constant 0 : i32
    %c0_i32_0 = arith.constant 0 : i32
    %c0_i32_1 = arith.constant 0 : i32
    return %c0_i32, %c0_i32_0 : i32, i32
  }
  func.func @transform_12(%arg0: i32) -> (i32, i32) {
    %c0_i32 = arith.constant 0 : i32
    %c0_i32_0 = arith.constant 0 : i32
    %c0_i32_1 = arith.constant 0 : i32
    return %c0_i32, %c0_i32_0 : i32, i32
  }
  func.func @transform_13(%arg0: i32) -> (i32, i32) {
    %c0_i32 = arith.constant 0 : i32
    %c0_i32_0 = arith.constant 0 : i32
    %c0_i32_1 = arith.constant 0 : i32
    return %c0_i32, %c0_i32_0 : i32, i32
  }
  func.func @transform_14(%arg0: i32) -> (i32, i32, i32) {
    %c0_i32 = arith.constant 0 : i32
    %c0_i32_0 = arith.constant 0 : i32
    %c0_i32_1 = arith.constant 0 : i32
    return %arg0, %c0_i32, %c0_i32_0 : i32, i32, i32
  }
}

</mosaic_0001>

<bundles_post_ra>
// kernel: tpu_custom_call.1
= control target key start
LH: loop header
LB: loop body
LE: loop exit
PB: predicated region body
PF: predicated region fallthrough
CT: control target
= control target key end

     0   :  { %s1662_s0 = inlined_call_operand.vmem [shape: f32[2,8,32], index: 0, kind: input, shape index: {}]   ;;  %s1663_s1 = inlined_call_operand.vmem [shape: f32[2,8,8], index: 1, kind: input, shape index: {}]   ;;  %s1664_s2 = inlined_call_operand.vmem [shape: f32[1,32], index: 2, kind: input, shape index: {}]   ;;  %s1665_s3 = inlined_call_operand.vmem [shape: f32[1,32], index: 3, kind: input, shape index: {}]   ;;  %s1666_s4 = inlined_call_operand.vmem [shape: bf16[32,96], index: 4, kind: input, shape index: {}]   ;;  %s1667_s5 = inlined_call_operand.vmem [shape: f32[1,96], index: 5, kind: input, shape index: {}]   ;;  %s1668_s6 = inlined_call_operand.vmem [shape: bf16[32,32], index: 6, kind: input, shape index: {}]   ;;  %s1669_s7 = inlined_call_operand.vmem [shape: f32[1,32], index: 7, kind: input, shape index: {}]   ;;  %s1670_s8 = inlined_call_operand.vmem [shape: f32[1,32], index: 8, kind: input, shape index: {}]   ;;  %s1671_s9 = inlined_call_operand.vmem [shape: f32[1,32], index: 9, kind: input, shape index: {}]   ;;  %s1672_s10 = inlined_call_operand.vmem [shape: bf16[32,128], index: 10, kind: input, shape index: {}]   ;;  %s1673_s11 = inlined_call_operand.vmem [shape: f32[1,128], index: 11, kind: input, shape index: {}]   ;;  %s1674_s12 = inlined_call_operand.vmem [shape: bf16[128,32], index: 12, kind: input, shape index: {}]   ;;  %s1675_s13 = inlined_call_operand.vmem [shape: f32[1,32], index: 13, kind: input, shape index: {}]   ;;  %s1676_s14 = inlined_call_operand.hbm [shape: f32[2,8,32], index: 14, kind: output, shape index: {}]  }
   0x1   :  { %1678 = sst [smem:[#allocation5_spill]] %s1662_s0 }
   0x2   :  { %1679 = sst [smem:[#allocation6_spill]] %s1663_s1 }
   0x3   :  { %1680 = sst [smem:[#allocation7_spill]] %s1664_s2 }
   0x4   :  { %1681 = sst [smem:[#allocation8_spill]] %s1665_s3 }
   0x5   :  { %1682 = sst [smem:[#allocation9_spill]] %s1666_s4 }
   0x6   :  { %19 = vsyncpa [#allocation3], 0 }
   0x7   :  { %21 = vsyncpa [#allocation3 + $0x1], 0  ;;  %s1439_s29 = smov 0   ;;  %s1441_s30 = smov 0  }
   0x8   :  { %s1443_s15 = smov 0   ;;  %s1445_s16 = smov 0  }
   0x9 LB: > { %s1460_s17 = sadd.s32 4294967295, %s1347_s16   ;;  %s1104_s18 = sadd.s32 4294967294, %s1347_s16   ;;  %s1347_s16 = sphi %s1445_s16, %s1694_s16   ;;  %s1343_s15 = sphi %s1443_s15, %s1693_s15   ;;  %s1339_s30 = sphi %s1441_s30, %s1692_s30   ;;  %s1335_s29 = sphi %s1439_s29, %s1691_s29  }
   0xa   : > { %s1464_s19 = sadd.s32 1, %s1347_s16   ;;  %s338_s20 = sadd.s32 1, %s1343_s15 }
   0xb   : > { %s335_s21 = ssub.s32 %s1347_s16, %s1464_s19  ;;  %p348_p0 = scmp.ne.s32.totalorder %s1343_s15, %s1339_s30 }
   0xc   : > { %p336_p1 = scmp.eq.s32.totalorder %s335_s21, 0  ;;  %p349_p2 = scmp.eq.s32.totalorder %s1460_s17, 1 }
   0xd   : > { %p354_p3 = scmp.ne.s32.totalorder %s1339_s30, %s1335_s29  ;;  %p355_p4 = scmp.eq.s32.totalorder %s1104_s18, 1 }
   0xe   : > { %s1475_s22 = scalar_select %p336_p1, %s1343_s15, %s338_s20  }
   0xf   : > { %p1477_p5 = por %p349_p2, %p348_p0  ;;  %p1481_p6 = por %p355_p4, %p354_p3 }
  0x10   : > { %p1107_p7 = scmp.ge.s32.totalorder %s1347_s16, 1  ;;  %p423_p8 = scmp.lt.s32.totalorder %s1347_s16, 3 }
  0x12   : > { %p424_p9 = pnand %p1107_p7, %p423_p8 }
  0x13   : > { %p472_p10 = scmp.lt.s32.totalorder (!%p424_p9), %s1460_s17, 1  ;;  %s1685_s0 = sld [smem:[#allocation5_spill]] (!%p424_p9) }
  0x14   : > { %427 = sbr.rel (%p424_p9) target bundleno = 2066 (0x812), region = 76  ;;  %s1686_s4 = sld [smem:[#allocation9_spill]] (!%p424_p9) }
  0x15   : > { %s1687_s2 = sld [smem:[#allocation7_spill]] (!%p424_p9)  ;;  %s1351_s20 = smov (!%p424_p9), 64  }
  0x16   : > { %s1688_s3 = sld [smem:[#allocation8_spill]] (!%p424_p9)  ;;  %s1352_s21 = smov (!%p424_p9), 96  }
  0x17   : > { %s1353_s27 = smov (!%p424_p9), 112   ;;  %s1355_s28 = smov (!%p424_p9), 56  }
  0x18   : > { %s1690_s1 = sld [smem:[#allocation6_spill]] (!%p424_p9) }
  0x19   : > { %s1489_s25 = scalar_select %p472_p10, %s1460_s17, 1  ;;  %vm484_vm0 = vcmask 261120   ;;  %v1349_v2 = vmov 32.0   ;;  %v1253_v32 = vld [vmem:[%s1667_s5] ss:$0 sm:$0xff]  ;;  %vm606_vm5 = vcmask 1043456  }
  0x1a   : > { %1259 = vrcp.f32 %v1349_v2  ;;  %v1184_v14 = vld [vmem:[%s1686_s4 + $0x8] sm:$0xff]  ;;  %v1183_v15 = vld [vmem:[%s1686_s4] sm:$0xff]  ;;  %vm570_vm6 = vcmask 64512   ;;  %vm805_vm7 = vcmask 130048   ;;  %vm807_vm8 = vcmask 195584  }
  0x1b   : > { %s1677_s26 = sshll.u32 %s1489_s25, 3  ;;  %552 = vmatpush.bf16.msra.mxu0 %v1184_v14  ;;  %v1251_v25 = vld [vmem:[%s1687_s2] ss:$0 sm:$0xff]  ;;  %s1357_s2 = smov 104  }
  0x1c   : > { %s475_s18 = scalar_lea.vmem %s1685_s0, %s1677_s26  ;;  %v1252_v28 = vld [vmem:[%s1688_s3] ss:$0 sm:$0xff]  ;;  %s1354_s26 = smov 88  }
  0x1d   : > { %v1497_v0 = vld [vmem:[%s475_s18] sm:$0xff]  ;;  %s1350_s18 = smov 120   ;;  %s1356_s0 = smov 72  }
  0x1e   : > { %v485_v1 = vsel %vm484_vm0, %v1497_v0, 0.0 }
  0x1f   : > { %486 = vadd.xlane.f32.xlu0 %v485_v1  ;;  %553 = vmatpush.bf16.msra.mxu0 %v1183_v15 }
  0x20   : > { %v1260_v3 = vpop.eup %1259 }
  0x21   : > { %v489_v4 = vmul.f32 32.0, %v1260_v3  ;;  %vm493_vm1 = vweird.f32 %v1260_v3 }
  0x23   : > { %v490_v5 = vsub.f32 1.0, %v489_v4 }
  0x25   : > { %v491_v6 = vmul.f32 %v1260_v3, %v490_v5 }
  0x27   : > { %v492_v7 = vadd.f32 %v1260_v3, %v491_v6 }
  0x29   : > { %v1501_v8 = vsel %vm493_vm1, %v1260_v3, %v492_v7 }
  0x92   : > { %v487_v9 = vpop.xlane.xlu0 %486 }
  0x93   : > { %v495_v10 = vmul.f32 %v1501_v8, %v487_v9 }
  0x95   : > { %v496_v11 = vsub.f32 %v1497_v0, %v495_v10 }
  0x97   : > { %v497_v12 = vmul.f32 %v496_v11, %v496_v11 }
  0x99   : > { %v498_v13 = vsel %vm484_vm0, %v497_v12, 0.0 }
  0x9a   : > { %499 = vadd.xlane.f32.xlu0 %v498_v13 }
 0x10d   : > { %v500_v16 = vpop.xlane.xlu0 %499 }
 0x10e   : > { %v501_v17 = vmul.f32 %v500_v16, %v1501_v8 }
 0x110   : > { %v502_v18 = vadd.f32 1e-05, %v501_v17 }
 0x112   : > { %1261 = vrsqrt.f32 %v502_v18  ;;  %vm509_vm3 = vweird.f32 %v502_v18 }
 0x118   : > { %v1262_v19 = vpop.eup %1261 }
 0x119   : > { %v504_v20 = vmul.f32 %v1262_v19, %v502_v18  ;;  %vm510_vm2 = vweird.f32 %v1262_v19 }
 0x11a   : > { %vm511_vm4 = vmor %vm509_vm3, %vm510_vm2 }
 0x11b   : > { %v505_v21 = vmul.f32 %v1262_v19, %v504_v20 }
 0x11d   : > { %v506_v22 = vmul.f32 0.5, %v505_v21 }
 0x11f   : > { %v507_v23 = vsub.f32 1.5, %v506_v22 }
 0x121   : > { %v508_v24 = vmul.f32 %v1262_v19, %v507_v23 }
 0x123   : > { %v512_v26 = vsel %vm511_vm4, %v1262_v19, %v508_v24 }
 0x124   : > { %v513_v27 = vmul.f32 %v512_v26, %v496_v11 }
 0x126   : > { %v517_v29 = vmul.f32 %v1251_v25, %v513_v27 }
 0x128   : > { %v521_v30 = vadd.f32 %v1252_v28, %v517_v29 }
 0x12a   : > { %v522_v31 = vpack.c.bf16 %v521_v30, %v521_v30 }
 0x12c   : > { %1119 = vmatmul.msk.bf16.vlgmr.msra.gmra.mxu0 %vm484_vm0, %v522_v31 }
 0x1a9   : > { %v555_v33 = vpop.f32.mrf.mxu0 }
 0x1aa   : > { %v556_v34 = vadd.f32 %v1253_v32, %v555_v33 }
 0x1ac   : > { %v564_v35 = vpack.c.bf16 %v556_v34, %v556_v34 }
 0x1ae   : > { %v566_v36 = vunpack.c.l.b16 %v564_v35 }
 0x1b0   : > { %v1523_v37 = vpack.c.b16 %v566_v36, %v566_v36 }
 0x1b1   : > { %v557_v38 = vpop.f32.mrf.mxu0 }
 0x1b2   : > { %624 = vrot.lane.b32.xlu0 %v1523_v37, %s1350_s18  ;;  %601 = vrot.lane.b32.xlu2 %v1523_v37, %s1351_s20  ;;  %s1358_s18 = smov 80  }
 0x1b3   : > { %568 = vrot.lane.b32.xlu1 %v1523_v37, %s1352_s21 }
 0x1ba   : > { %680 = vrot.lane.b32.xlu0 %v1523_v37, %s1353_s27  ;;  %626 = vrot.lane.b32.xlu2 %v1523_v37, %s1354_s26  ;;  %s1360_s27 = smov 48   ;;  %s1361_s26 = smov 16  }
 0x1c2   : > { %658 = vrot.lane.b32.xlu0 %v1523_v37, %s1355_s28  ;;  %738 = vrot.lane.b32.xlu2 %v1523_v37, %s1356_s0  ;;  %s1689_s0 = sshll.u32 %s1489_s25, 3  ;;  %s1359_s25 = smov 40  }
 0x1c3   : > { %s479_s21 = scalar_lea.vmem %s1690_s1, %s1689_s0  ;;  %s1362_s28 = smov 8  }
 0x1c4   : > { %v559_v53 = vld [vmem:[%s479_s21] sm:$0xff]  ;;  %s469_s21 = sand.u32 1, %s1339_s30  }
 0x1ca   : > { %736 = vrot.lane.b32.xlu2 %v1523_v37, %s1357_s2 }
 0x1d2   : > { %682 = vrot.lane.b32.xlu2 %v1523_v37, %s1358_s18  ;;  %s1363_s18 = smov 24  }
 0x20c   : > { %v602_v39 = vpop.permute.xlu2 %601 }
 0x20d   : > { %v608_v40 = vsel %vm606_vm5, %v602_v39, 0 }
 0x20e   : > { %617 = vmatpush.bf16.msra.mxu2 %v608_v40 }
 0x214   : > { %v627_v41 = vpop.permute.xlu2 %626 }
 0x215   : > { %v632_v42 = vsel %vm570_vm6, %v627_v41, 0 }
 0x216   : > { %641 = vmatpush.bf16.xpose.msrb.mxu2 %v632_v42 }
 0x21c   : > { %v739_v43 = vpop.permute.xlu2 %738 }
 0x21d   : > { %v744_v44 = vsel %vm570_vm6, %v739_v43, 0 }
 0x21e   : > { %753 = vmatpush.bf16.xpose.msra.mxu3 %v744_v44 }
 0x224   : > { %v737_v45 = vpop.permute.xlu2 %736  ;;  %v625_v48 = vpop.permute.xlu0 %624 }
 0x225   : > { %v569_v46 = vpop.permute.xlu1 %568  ;;  %1126 = vmatmul.msk.bf16.vlgmr.msra.gmra.mxu3 %vm570_vm6, %v737_v45 }
 0x226   : > { %v575_v47 = vsel %vm570_vm6, %v569_v46, 0 }
 0x227   : > { %584 = vmatpush.bf16.xpose.msra.mxu1 %v575_v47 }
 0x22c   : > { %v683_v49 = vpop.permute.xlu2 %682  ;;  %v681_v51 = vpop.permute.xlu0 %680 }
 0x22d   : > { %v688_v50 = vsel %vm570_vm6, %v683_v49, 0 }
 0x22e   : > { %1120 = vmatmul.msk.bf16.vlgmr.msra.gmra.mxu1 %vm570_vm6, %v564_v35  ;;  %697 = vmatpush.bf16.xpose.msrb.mxu0 %v688_v50 }
 0x234   : > { %v659_v2 = vpop.permute.xlu0 %658 }
 0x235   : > { %1124 = vmatmul.msk.bf16.vlgmr.msrb.gmra.mxu0 %vm570_vm6, %v681_v51  ;;  %v664_v14 = vsel %vm606_vm5, %v659_v2, 0 }
 0x2a8   : > { %v755_v52 = vpop.f32.mrf.mxu3 }
 0x2a9   : > { %v756_v58 = vadd.f32 %v755_v52, %v559_v53 }
 0x2ab   : > { %v586_v54 = vpop.f32.mrf.mxu1  ;;  %v759_v63 = vsel %vm570_vm6, %v756_v58, -inf }
 0x2ac   : > { %v587_v55 = vadd.f32 %v586_v54, %v559_v53  ;;  %v1186_v54 = vld [vmem:[%s1668_s6 + $0x8] sm:$0xff] }
 0x2ad   : > { %835 = vmatpush.bf16.msra.mxu0 %v1186_v54 }
 0x2ae   : > { %v590_v56 = vsel %vm570_vm6, %v587_v55, -inf }
 0x2af   : > { %591 = vmax.xlane.f32.xlu1 %v590_v56 }
 0x2b0   : > { %v757_v57 = vpop.f32.mrf.mxu3 }
 0x2b2   : > { %v699_v59 = vpop.f32.mrf.mxu0 }
 0x2b3   : > { %v588_v60 = vpop.f32.mrf.mxu1  ;;  %v700_v61 = vadd.f32 %v699_v59, %v559_v53 }
 0x2b5   : > { %v703_v62 = vsel %vm570_vm6, %v700_v61, -inf }
 0x2b6   : > { %704 = vmax.xlane.f32.xlu0 %v703_v62 }
 0x2b7   : > { %760 = vmax.xlane.f32.xlu1 %v759_v63 }
 0x2ba   : > { %v701_v1 = vpop.f32.mrf.mxu0 }
 0x2d0   : > { %770 = vrot.lane.b32.xlu1 %v1523_v37, %s1359_s25  ;;  %s1108_s25 = sshll.u32 %s469_s21, 3 }
 0x2d1   : > { %s471_s20 = scalar_lea.vmem [#allocation2], %s1108_s25  ;;  %s1305_s25 = scalar_lea.hbm %s1676_s14, 16 }
 0x2d2   : > { %s1030_s1 = sshll.u32 %s471_s20, 4  ;;  %s1031_s1 = int_to_ptr.vmem [resolvable:$true] %s1030_s1 }
 0x322   : > { %v592_v3 = vpop.xlane.xlu1 %591 }
 0x323   : > { %v593_v4 = vsub.f32 %v587_v55, %v592_v3  ;;  %v1185_v55 = vld [vmem:[%s1668_s6] sm:$0xff] }
 0x324   : > { %836 = vmatpush.bf16.msra.mxu0 %v1185_v55  ;;  %v1254_v3 = vld [vmem:[%s1669_s7] ss:$0 sm:$0xff] }
 0x325   : > { %v594_v5 = vmul.f32 1.442695, %v593_v4 }
 0x327   : > { %1263 = vpow2.f32 %v594_v5 }
 0x329   : > { %v705_v6 = vpop.xlane.xlu0 %704 }
 0x32a   : > { %v706_v7 = vsub.f32 %v700_v61, %v705_v6  ;;  %v761_v9 = vpop.xlane.xlu1 %760 }
 0x32b   : > { %v762_v11 = vsub.f32 %v756_v58, %v761_v9 }
 0x32c   : > { %v707_v10 = vmul.f32 1.442695, %v706_v7 }
 0x32d   : > { %v1264_v12 = vpop.eup %1263  ;;  %v763_v15 = vmul.f32 1.442695, %v762_v11 }
 0x32e   : > { %1265 = vpow2.f32 %v707_v10  ;;  %v600_v13 = vpack.c.bf16 %v1264_v12, %v1264_v12  ;;  %v596_v28 = vsel %vm570_vm6, %v1264_v12, 0.0 }
 0x32f   : > { %1267 = vpow2.f32 %v763_v15  ;;  %v1188_v15 = vld [vmem:[%s1672_s10 + $0x8] sm:$0xff] }
 0x330   : > { %1121 = vmatmul.msk.bf16.vlgmr.msra.gmra.mxu2 %vm570_vm6, %v600_v13 }
 0x331   : > { %673 = vmatpush.bf16.msra.mxu2 %v664_v14 }
 0x334   : > { %v1266_v16 = vpop.eup %1265 }
 0x335   : > { %v709_v17 = vsel %vm570_vm6, %v1266_v16, 0.0  ;;  %v1268_v18 = vpop.eup %1267  ;;  %v713_v35 = vpack.c.bf16 %v1266_v16, %v1266_v16 }
 0x336   : > { %710 = vadd.xlane.f32.xlu0 %v709_v17  ;;  %v765_v19 = vsel %vm570_vm6, %v1268_v18, 0.0 }
 0x33e   : > { %766 = vadd.xlane.f32.xlu0 %v765_v19 }
 0x340   : > { %1122 = vmatmul.msk.bf16.vlgmr.msrb.gmra.mxu2 %vm570_vm6, %v625_v48 }
 0x342   : > { %v771_v20 = vpop.permute.xlu1 %770 }
 0x343   : > { %v776_v21 = vsel %vm606_vm5, %v771_v20, 0 }
 0x344   : > { %785 = vmatpush.bf16.msrb.mxu2 %v776_v21 }
 0x3a9   : > { %v711_v39 = vpop.xlane.xlu0 %710 }
 0x3b1   : > { %v767_v48 = vpop.xlane.xlu0 %766 }
 0x3b3   : > { %v619_v22 = vpop.f32.mrf.mxu2 }
 0x3bb   : > { %v621_v23 = vpop.f32.mrf.mxu2 }
 0x3c3   : > { %v643_v24 = vpop.f32.mrf.mxu2 }
 0x3c4   : > { %v644_v25 = vadd.f32 %v643_v24, %v559_v53 }
 0x3c6   : > { %v647_v26 = vsel %vm570_vm6, %v644_v25, -inf }
 0x3c7   : > { %648 = vmax.xlane.f32.xlu2 %v647_v26 }
 0x3cb   : > { %v645_v27 = vpop.f32.mrf.mxu2 }
 0x3df   : > { %714 = vrot.lane.b32.xlu2 %v1523_v37, %s1360_s27  ;;  %v769_v37 = vpack.c.bf16 %v1268_v18, %v1268_v18  ;;  %s1180_s27 = sshll.u32 %s1460_s17, 3  ;;  %s1018_s17 = scalar_lea.sflag [#allocation3], %s469_s21 }
 0x3e0   : > { %s1028_s2 = scalar_lea.hbm %s1676_s14, %s1180_s27 }
 0x3e1   : > { %s1032_s3 = sshll.u32 %s1028_s2, 4  ;;  %s1033_s3 = int_to_ptr.hbm [resolvable:$true] %s1032_s3 }
 0x3e2   : > { %s1299_s4 = sshra.s32 %s1033_s3, 4  ;;  %s1300_s4 = int_to_ptr.hbm [resolvable:$true] %s1299_s4 }
 0x3e3   : > { %p1306_p0 = scmp.lt.s32.totalorder %s1300_s4, %s1676_s14 }
 0x408   : > { %597 = vadd.xlane.f32.xlu2 %v596_v28 }
 0x43a   : > { %v649_v29 = vpop.xlane.xlu2 %648 }
 0x43b   : > { %v650_v30 = vsub.f32 %v644_v25, %v649_v29  ;;  %v1255_v25 = vld [vmem:[%s1670_s8] ss:$0 sm:$0xff] }
 0x43d   : > { %v651_v31 = vmul.f32 1.442695, %v650_v30 }
 0x43f   : > { %1269 = vpow2.f32 %v651_v31  ;;  %v1196_v31 = vld [vmem:[%s1674_s12 + $0x38] sm:$0xff] }
 0x440   : > { %1271 = vrcp.f32 %v711_v39  ;;  %1002 = vmatpush.bf16.msrb.mxu3 %v1196_v31 }
 0x442   : > { %v715_v32 = vpop.permute.xlu2 %714 }
 0x443   : > { %v720_v33 = vsel %vm606_vm5, %v715_v32, 0  ;;  %v1195_v32 = vld [vmem:[%s1674_s12 + $0x30] sm:$0xff] }
 0x444   : > { %729 = vmatpush.bf16.msrb.mxu1 %v720_v33  ;;  %1003 = vmatpush.bf16.msrb.mxu3 %v1195_v32  ;;  %v1194_v33 = vld [vmem:[%s1674_s12 + $0x28] sm:$0xff] }
 0x445   : > { %v1270_v34 = vpop.eup %1269 }
 0x446   : > { %v657_v36 = vpack.c.bf16 %v1270_v34, %v1270_v34  ;;  %v653_v38 = vsel %vm570_vm6, %v1270_v34, 0.0  ;;  %v1272_v41 = vpop.eup %1271  ;;  %v1193_v34 = vld [vmem:[%s1674_s12 + $0x20] sm:$0xff] }
 0x447   : > { %654 = vadd.xlane.f32.xlu1 %v653_v38  ;;  %1125 = vmatmul.msk.bf16.vlgmr.msrb.gmra.mxu1 %vm570_vm6, %v713_v35  ;;  %v1192_v35 = vld [vmem:[%s1674_s12 + $0x18] sm:$0xff]  ;;  %v1257_v38 = vld [vmem:[%s1673_s11] ss:$0 sm:$0xff] }
 0x448   : > { %1123 = vmatmul.msk.bf16.vlgmr.msra.gmra.mxu2 %vm570_vm6, %v657_v36  ;;  %905 = vmatpush.bf16.msra.mxu1 %v1188_v15  ;;  %v1191_v36 = vld [vmem:[%s1674_s12 + $0x10] sm:$0xff] }
 0x449   : > { %1004 = vmatpush.bf16.msrb.mxu3 %v1194_v33 }
 0x44d   : > { %1005 = vmatpush.bf16.msrb.mxu3 %v1193_v34 }
 0x451   : > { %1006 = vmatpush.bf16.msrb.mxu3 %v1192_v35 }
 0x455   : > { %1007 = vmatpush.bf16.msrb.mxu3 %v1191_v36 }
 0x458   : > { %1127 = vmatmul.msk.bf16.vlgmr.msrb.gmra.mxu2 %vm570_vm6, %v769_v37  ;;  %v1190_v37 = vld [vmem:[%s1674_s12 + $0x8] sm:$0xff] }
 0x459   : > { %1008 = vmatpush.bf16.msrb.mxu3 %v1190_v37 }
 0x47b   : > { %v598_v56 = vpop.xlane.xlu2 %597 }
 0x4ba   : > { %v655_v40 = vpop.xlane.xlu1 %654 }
 0x4bb   : > { %1273 = vrcp.f32 %v655_v40 }
 0x4bc   : > { %1275 = vrcp.f32 %v767_v48 }
 0x4bd   : > { %1277 = vrcp.f32 %v598_v56 }
 0x4c1   : > { %v1274_v44 = vpop.eup %1273 }
 0x4c2   : > { %v1276_v50 = vpop.eup %1275 }
 0x4c3   : > { %v1278_v57 = vpop.eup %1277 }
 0x4c4   : > { %v731_v42 = vpop.f32.mrf.mxu1  ;;  %v623_v59 = vmul.f32 %v1278_v57, %v619_v22 }
 0x4c5   : > { %v735_v43 = vmul.f32 %v1272_v41, %v731_v42  ;;  %v1189_v41 = vld [vmem:[%s1674_s12] sm:$0xff] }
 0x4c6   : > { %1009 = vmatpush.bf16.msrb.mxu3 %v1189_v41 }
 0x4c7   : > { %797 = vrot.lane.b32.xlu1 %v735_v43, %s1361_s26  ;;  %s1301_s26 = scalar_lea.hbm %s1300_s4, 8 }
 0x4c8   : > { %p1302_p11 = scmp.ne.s32.totalorder %s1300_s4, %s1301_s26  ;;  %p1307_p1 = scmp.lt.s32.totalorder %s1305_s25, %s1301_s26 }
 0x4ca   : > { %p1303_p12 = pnand %p1302_p11, %p1477_p5  ;;  %p1308_p2 = por %p1307_p1, %p1306_p0 }
 0x4cb   : > { %v675_v45 = vpop.f32.mrf.mxu2 }
 0x4cc   : > { %v679_v46 = vmul.f32 %v1274_v44, %v675_v45  ;;  %v733_v47 = vpop.f32.mrf.mxu1  ;;  %p1304_p13 = pneg %p1303_p12 }
 0x4ce   : > { %793 = vrot.lane.b32.xlu0 %v679_v46, %s1362_s28  ;;  %p1309_p3 = pnand %p1308_p2, %p1304_p13 }
 0x4d3   : > { %v677_v49 = vpop.f32.mrf.mxu2 }
 0x4db   : > { %v787_v51 = vpop.f32.mrf.mxu2 }
 0x4dc   : > { %v791_v52 = vmul.f32 %v1276_v50, %v787_v51 }
 0x4de   : > { %801 = vrot.lane.b32.xlu0 %v791_v52, %s1363_s18 }
 0x4e3   : > { %v789_v53 = vpop.f32.mrf.mxu2 }
 0x539   : > { %v798_v61 = vpop.permute.xlu1 %797 }
 0x540   : > { %v794_v58 = vpop.permute.xlu0 %793 }
 0x541   : > { %v804_v60 = vsel %vm570_vm6, %v623_v59, %v794_v58  ;;  %v1258_v59 = vld [vmem:[%s1675_s13] ss:$0 sm:$0xff] }
 0x542   : > { %v806_v63 = vsel %vm805_vm7, %v804_v60, %v798_v61 }
 0x550   : > { %v802_v62 = vpop.permute.xlu0 %801 }
 0x551   : > { %v808_v1 = vsel %vm807_vm8, %v806_v63, %v802_v62 }
 0x552   : > { %v809_v2 = vpack.c.bf16 %v808_v1, %v808_v1 }
 0x554   : > { %1136 = vmatmul.msk.bf16.vlgmr.msra.gmra.mxu0 %vm484_vm0, %v809_v2 }
 0x5d1   : > { %v838_v4 = vpop.f32.mrf.mxu0 }
 0x5d2   : > { %v839_v5 = vadd.f32 %v1254_v3, %v838_v4 }
 0x5d4   : > { %v1577_v6 = vadd.f32 %v839_v5, %v1497_v0  ;;  %v1187_v0 = vld [vmem:[%s1672_s10] sm:$0xff] }
 0x5d5   : > { %906 = vmatpush.bf16.msra.mxu1 %v1187_v0 }
 0x5d6   : > { %v845_v7 = vsel %vm484_vm0, %v1577_v6, 0.0 }
 0x5d7   : > { %846 = vadd.xlane.f32.xlu0 %v845_v7 }
 0x5d9   : > { %v840_v9 = vpop.f32.mrf.mxu0 }
 0x64a   : > { %v847_v10 = vpop.xlane.xlu0 %846 }
 0x64b   : > { %v848_v11 = vmul.f32 %v847_v10, %v1501_v8 }
 0x64d   : > { %v849_v12 = vsub.f32 %v1577_v6, %v848_v11 }
 0x64f   : > { %v850_v13 = vmul.f32 %v849_v12, %v849_v12 }
 0x651   : > { %v851_v14 = vsel %vm484_vm0, %v850_v13, 0.0 }
 0x652   : > { %852 = vadd.xlane.f32.xlu2 %v851_v14 }
 0x6c5   : > { %v853_v16 = vpop.xlane.xlu2 %852 }
 0x6c6   : > { %v854_v17 = vmul.f32 %v853_v16, %v1501_v8  ;;  %v1256_v8 = vld [vmem:[%s1671_s9] ss:$0 sm:$0xff] }
 0x6c8   : > { %v855_v18 = vadd.f32 1e-05, %v854_v17 }
 0x6ca   : > { %1279 = vrsqrt.f32 %v855_v18  ;;  %vm862_vm10 = vweird.f32 %v855_v18 }
 0x6d0   : > { %v1280_v19 = vpop.eup %1279 }
 0x6d1   : > { %v857_v20 = vmul.f32 %v1280_v19, %v855_v18  ;;  %vm863_vm9 = vweird.f32 %v1280_v19 }
 0x6d2   : > { %vm864_vm11 = vmor %vm862_vm10, %vm863_vm9 }
 0x6d3   : > { %v858_v21 = vmul.f32 %v1280_v19, %v857_v20 }
 0x6d5   : > { %v859_v22 = vmul.f32 0.5, %v858_v21 }
 0x6d7   : > { %v860_v23 = vsub.f32 1.5, %v859_v22 }
 0x6d9   : > { %v861_v24 = vmul.f32 %v1280_v19, %v860_v23 }
 0x6db   : > { %v865_v26 = vsel %vm864_vm11, %v1280_v19, %v861_v24 }
 0x6dc   : > { %v866_v27 = vmul.f32 %v865_v26, %v849_v12 }
 0x6de   : > { %v870_v28 = vmul.f32 %v1255_v25, %v866_v27 }
 0x6e0   : > { %v874_v29 = vadd.f32 %v1256_v8, %v870_v28 }
 0x6e2   : > { %v875_v30 = vpack.c.bf16 %v874_v29, %v874_v29 }
 0x6e4   : > { %1145 = vmatmul.msk.bf16.vlgmr.msra.gmra.mxu1 %vm484_vm0, %v875_v30 }
 0x761   : > { %v908_v39 = vpop.f32.mrf.mxu1 }
 0x762   : > { %v909_v40 = vadd.f32 %v1257_v38, %v908_v39 }
 0x764   : > { %v1146_v42 = vmul.f32 -1.702, %v909_v40 }
 0x766   : > { %v914_v43 = vmul.f32 1.442695, %v1146_v42 }
 0x768   : > { %1281 = vpow2.f32 %v914_v43 }
 0x769   : > { %v910_v44 = vpop.f32.mrf.mxu1 }
 0x76e   : > { %v1282_v45 = vpop.eup %1281 }
 0x76f   : > { %v916_v46 = vadd.f32 1.0, %v1282_v45 }
 0x771   : > { %1283 = vrcp.f32 %v916_v46  ;;  %v928_v50 = vand.u32 2147483648, %v916_v46  ;;  %v926_v52 = vand.u32 2147483647, %v916_v46  ;;  %vm922_vm13 = vweird.f32 %v916_v46 }
 0x773   : > { %v929_v54 = vor.u32 1.1754944e-38, %v928_v50  ;;  %vm927_vm15 = vcmp.eq.f32.partialorder %v926_v52, 8.507059e+37 }
 0x777   : > { %v1284_v47 = vpop.eup %1283 }
 0x778   : > { %v918_v48 = vmul.f32 %v1284_v47, %v916_v46  ;;  %vm923_vm12 = vweird.f32 %v1284_v47 }
 0x779   : > { %vm924_vm14 = vmor %vm922_vm13, %vm923_vm12 }
 0x77a   : > { %v919_v49 = vsub.f32 1.0, %v918_v48 }
 0x77c   : > { %v920_v51 = vmul.f32 %v1284_v47, %v919_v49 }
 0x77e   : > { %v921_v53 = vadd.f32 %v1284_v47, %v920_v51 }
 0x780   : > { %v925_v55 = vsel %vm924_vm14, %v1284_v47, %v921_v53 }
 0x781   : > { %v930_v56 = vsel %vm927_vm15, %v929_v54, %v925_v55 }
 0x782   : > { %v932_v57 = vmul.f32 %v930_v56, %v909_v40 }
 0x784   : > { %v933_v58 = vpack.c.bf16 %v932_v57, %v932_v57 }
 0x786   : > { %1010 = vmatmul.bf16.vlgmr.msrb.gmra.mxu3 %v933_v58 }
 0x809   : > { %v1011_v60 = vpop.f32.mrf.mxu3 }
 0x80a   : > { %v1012_v61 = vadd.f32 %v1258_v59, %v1011_v60 }
 0x80c   : > { %v1015_v62 = vadd.f32 %v1012_v61, %v1577_v6 }
 0x80e   : > { %1016 = vst.msk [vmem:[%s471_s20] sm:$0xff] %vm484_vm0, %v1015_v62 }
 0x80f   : > { %1312 = shalt.err (!%p1309_p3)
}
 0x810   : > { %1197 = dma.vmem_to_hbm [thread:$0]  (%p1477_p5), %s1031_s1, 128, %s1033_s3, %s1018_s17  }
 0x811   : > { %v1013_v63 = vpop.f32.mrf.mxu3 }
 0x812 PF: > { %p1203_p4 = scmp.ge.s32.totalorder %s1347_s16, 2  ;;  %s1044_s21 = sand.u32 1, %s1335_s29  }
 0x813   : > { %s1045_s2 = scalar_lea.sflag [#allocation3], %s1044_s21 }
 0x814   : > { %p1200_p7 = pnand %p1203_p4, %p1481_p6 }
 0x816   : > { %p1201_p8 = pneg %p1200_p7 }
 0x818   : > { %1330 = dma.done.wait (%p1201_p8), %s1045_s2, 128  }
 0x819   : > { %1332 = vsyncadd (%p1201_p8), %s1045_s2, 4294967168  ;;  %p24_p9 = scmp.ge.s32.totalorder %s1464_s19, 4   ;;  %s1691_s29 = smov %s1339_s30 }
 0x81a   : > { %s1692_s30 = smov %s1343_s15  ;;  %s1693_s15 = smov %s1475_s22 }
 0x81b   : > { %s1694_s16 = smov %s1464_s19  ;;  %26 = sbr.rel (!%p24_p9) target bundleno = 9 (0x9), region = 114 }
 0x820   :  { %1051 = vsyncpa [#allocation3], 1 }
 0x821   :  { %1053 = vsyncpa [#allocation3 + $0x1], 1 }

</bundles_post_ra>
